<compile_context>
chip_gen: v7x
topology: tpu7x:2x2x1
jax: 0.10.0
libtpu: 0.0.40
codegen_flags: <defaults>
</compile_context>

<pallas_src>
import jax
import jax.numpy as jnp
from jax.experimental import pallas as pl
from jax.experimental.pallas import tpu as pltpu


def _copy_kernel(in_ref, out_ref):
    # Identity copy of one lane-dense tile.  The "unflatten" itself is purely
    # a metadata view; this kernel only exists for the materialize=True path.
    out_ref[...] = in_ref[...]


def _round_up(x, m):
    return ((x + m - 1) // m) * m


def _vmem_budget_bytes():
    """Per-TensorCore physical VMEM (64 MiB on v7x, 128 MiB on v5e/v6e)."""
    try:
        info = pltpu.get_tpu_info()
        vmem = getattr(info, "vmem_capacity_bytes", None)
        if vmem:
            return int(vmem)
    except Exception:
        pass
    return 64 * 1024 * 1024  # conservative floor (v7x)


def _choose_layout(B, F, itemsize, tile_cap_bytes):
    """Pick a lane-dense 2-D view (rows, lanes) of the flat buffer and a row block.

    rows * lanes == B * F, so the view is a pure metadata reshape of the
    row-major buffer.  Returns (rows, lanes, block_rows); the grid is
    pl.cdiv(rows, block_rows) with the ragged tail masked by Pallas.
    """
    n = B * F
    # Native sublane packing: (8,128) f32, (16,128) bf16, (32,128) int8/fp8.
    min_rows = max(8, 32 // max(1, itemsize))

    # Prefer a lane-dense factorization (lanes a multiple of 128, unmasked vst).
    rows, lanes = B, F  # fallback: original 2-D shape (last dim = full extent)
    for cand in (8192, 4096, 2048, 1024, 512, 256, 128):
        if n % cand == 0 and (n // cand) >= min_rows:
            rows, lanes = n // cand, cand
            break

    if rows <= min_rows:
        # Tiny array: one full-extent block (block first dim == array dim).
        return rows, lanes, rows

    # Block rows purely from the VMEM tile cap, rounded to a multiple of the
    # dtype-native sublane count; no divisibility requirement on `rows`.
    row_bytes = lanes * itemsize
    cap_rows = max(min_rows, (max(1, tile_cap_bytes // row_bytes) // min_rows) * min_rows)
    block_rows = min(cap_rows, _round_up(rows, min_rows))

    # Keep at least 2 grid steps so the "parallel" axis can shard across both
    # TensorCores on v7x (no-op on single-TC v5e/v6e).
    if pl.cdiv(rows, block_rows) < 2:
        block_rows = max(min_rows, _round_up(pl.cdiv(rows, 2), min_rows))

    return rows, lanes, block_rows


def _pallas_copy(x_flat):
    """Materialized identity copy of a (B, F) array via a lane-dense Pallas kernel."""
    B, F = x_flat.shape
    n = B * F
    itemsize = jnp.dtype(x_flat.dtype).itemsize

    vmem = _vmem_budget_bytes()
    # 4 live tiles (double-buffered in + out) must fit with headroom:
    #   v7x (64 MiB)  -> 8 MiB tiles, 48 MiB scoped limit
    #   v5e/v6e (128) -> 16 MiB tiles, 96 MiB scoped limit
    tile_cap = vmem // 8
    vmem_limit = min(vmem * 3 // 4, 96 * 1024 * 1024)

    rows, lanes, block_rows = _choose_layout(B, F, itemsize, tile_cap)

    x2d = x_flat.reshape(rows, lanes)  # metadata-only, same row-major order
    grid = (pl.cdiv(rows, block_rows),)

    out2d = pl.pallas_call(
        _copy_kernel,
        out_shape=jax.ShapeDtypeStruct((rows, lanes), x_flat.dtype),
        grid_spec=pltpu.PrefetchScalarGridSpec(
            num_scalar_prefetch=0,
            grid=grid,
            in_specs=[pl.BlockSpec((block_rows, lanes), lambda i: (i, 0))],
            out_specs=pl.BlockSpec((block_rows, lanes), lambda i: (i, 0)),
        ),
        compiler_params=pltpu.CompilerParams(
            dimension_semantics=("parallel",),
            vmem_limit_bytes=vmem_limit,
        ),
        cost_estimate=pl.CostEstimate(
            flops=0, transcendentals=0, bytes_accessed=2 * n * itemsize),
    )(x2d)

    return out2d.reshape(B, F)


def unflatten(x_flat, channel, height, width, *, materialize=False, donate=False):
    """Pallas/JAX equivalent of Unflatten(channel, height, width).forward(x_flat).

    x_flat: (B, C*H*W) row-major array (same element order as a PyTorch NCHW view).
    returns: (B, C, H, W) array.

    Default (materialize=False): pure metadata reshape — identical cost model to
    torch .view() on a contiguous tensor (free; folds into surrounding XLA).
    materialize=True: runs the lane-dense Pallas copy kernel first.
    donate=True: the caller is giving up the input buffer, so copying it is
    pure waste — the kernel is skipped and the reshaped view is returned.
    """
    B, F = x_flat.shape
    assert F == channel * height * width, "flat dim must equal C*H*W"
    if not materialize or donate:
        return x_flat.reshape(B, channel, height, width)
    return _pallas_copy(x_flat).reshape(B, channel, height, width)


if __name__ == "__main__":
    key = jax.random.PRNGKey(0)

    # Shapes consistent with the module: B=2, C=4, H=16, W=16 (flat dim 1024).
    B, C, H, W = 2, 4, 16, 16
    x_flat = jax.random.normal(key, (B, C * H * W), dtype=jnp.float32)
    ref = x_flat.reshape(B, C, H, W)

    # Fast path (what production code should use): zero-cost metadata reshape.
    y_view = unflatten(x_flat, C, H, W)
    jax.block_until_ready(y_view)

    # Pallas kernel path (materialized copy).
    y_copy = unflatten(x_flat, C, H, W, materialize=True)
    jax.block_until_ready(y_copy)

    assert y_view.shape == (B, C, H, W)
    assert y_copy.shape == (B, C, H, W)
    assert jnp.array_equal(y_view, ref)
    assert jnp.array_equal(y_copy, ref)

    # Second case: bf16 with an awkward row count, exercising the dtype-aware
    # row block, the cdiv grid and the masked ragged tail.
    B2, C2, H2, W2 = 5, 3, 16, 16
    x2 = jax.random.normal(jax.random.PRNGKey(1), (B2, C2 * H2 * W2),
                           dtype=jnp.bfloat16)
    ref2 = x2.reshape(B2, C2, H2, W2)
    y2 = unflatten(x2, C2, H2, W2, materialize=True)
    jax.block_until_ready(y2)
    assert y2.shape == (B2, C2, H2, W2)
    assert jnp.array_equal(y2, ref2)

    # Donated case: kernel is skipped entirely (free reshape).
    y_don = unflatten(x_flat, C, H, W, materialize=True, donate=True)
    jax.block_until_ready(y_don)
    assert jnp.array_equal(y_don, ref)

    print("KERNEL_OK")
</pallas_src>

<mosaic_0001>
module attributes {stable_mosaic.version = 11 : i64} {
  func.func @_copy_kernel(%arg0: i32, %arg1: memref<8x256xf32, #tpu.memory_space<vmem>>, %arg2: memref<8x256xf32, #tpu.memory_space<vmem>>) attributes {dimension_semantics = [#tpu.dimension_semantics<parallel>], iteration_bounds = array<i64: 1>, scalar_prefetch = 0 : i64, scratch_operands = 0 : i64, tpu.core_type = #tpu.core_type<tc>, window_params = [{transform_indices = @transform_0, window_bounds = array<i64: 8, 256>}, {transform_indices = @transform_1, window_bounds = array<i64: 8, 256>}]} {
    %c0 = arith.constant 0 : index
    %c0_0 = arith.constant 0 : index
    %0 = vector.load %arg1[%c0, %c0_0] : memref<8x256xf32, #tpu.memory_space<vmem>>, vector<8x256xf32>
    %c0_1 = arith.constant 0 : index
    %c0_2 = arith.constant 0 : index
    %1 = vector.load %arg2[%c0_1, %c0_2] : memref<8x256xf32, #tpu.memory_space<vmem>>, vector<8x256xf32>
    tpu.vector_store %arg2[%c0_1, %c0_2], %0 {strides = array<i32>} : memref<8x256xf32, #tpu.memory_space<vmem>>, vector<8x256xf32>,
    return
  }
  func.func @transform_0(%arg0: i32) -> (i32, i32) {
    %c0_i32 = arith.constant 0 : i32
    %c0_i32_0 = arith.constant 0 : i32
    return %arg0, %c0_i32 : i32, i32
  }
  func.func @transform_1(%arg0: i32) -> (i32, i32) {
    %c0_i32 = arith.constant 0 : i32
    %c0_i32_0 = arith.constant 0 : i32
    return %arg0, %c0_i32 : i32, i32
  }
}

</mosaic_0001>

<bundles_post_ra>
// kernel: tpu_custom_call.1
= control target key start
LH: loop header
LB: loop body
LE: loop exit
PB: predicated region body
PF: predicated region fallthrough
CT: control target
= control target key end

     0   :  { %6 = vsyncpa [#allocation3], 0  ;;  %s126_s0 = inlined_call_operand.hbm [shape: f32[8,256], index: 0, kind: input, shape index: {}]   ;;  %s127_s1 = inlined_call_operand.hbm [shape: f32[8,256], index: 1, kind: output, shape index: {}]  }
   0x1   :  { %7 = vsyncpa [#allocation4], 0  ;;  %s90_s6 = smov [#allocation2]   ;;  %s42_s10 = scalar_lea.hbm %s126_s0, 256 }
   0x2   :  { %s14_s7 = sshll.u32 %s90_s6, 4  ;;  %p43_p0 = scmp.ne.s32.totalorder %s126_s0, %s42_s10  ;;  %s15_s7 = int_to_ptr.vmem [resolvable:$true] %s14_s7 }
   0x3   :  { %p46_p1 = scmp.lt.u32.totalorder %s42_s10, %s126_s0 }
   0x5   :  { %p48_p2 = pnand %p46_p1, %p43_p0 }
   0x7   :  { %51 = shalt.err (!%p48_p2)
}
   0x8   :  { %s52_s15 = scalar_lea.vmem %s15_s7, 256  ;;  %p57_p4 = scmp.lt.s32.totalorder %s15_s7, %s15_s7 }
   0x9   :  { %p53_p3 = scmp.ne.s32.totalorder %s15_s7, %s52_s15  ;;  %p58_p5 = scmp.lt.s32.totalorder %s52_s15, %s52_s15 }
   0xb   :  { %p59_p6 = por %p58_p5, %p57_p4 }
   0xd   :  { %p60_p7 = pnand %p59_p6, %p53_p3 }
   0xf   :  { %63 = shalt.err (!%p60_p7)
}
  0x10   :  { %17 = dma.hbm_to_vmem [thread:$0]  %s126_s0, 256, %s15_s7, [#allocation3]  }
  0x11   :  { %86 = dma.done.wait [#allocation3], 256  }
  0x12   :  { %87 = vsyncadd [#allocation3], 4294967040  ;;  %s91_s18 = smov [#allocation5]   ;;  %v21_v0 = vld [vmem:[#allocation2] sm:$0xff]  ;;  %v22_v1 = vld [vmem:[#allocation2 + $0x8] sm:$0xff] }
  0x13   :  { %s31_s19 = sshll.u32 %s91_s18, 4  ;;  %23 = vst [vmem:[#allocation5] sm:$0xff] %v21_v0  ;;  %24 = vst [vmem:[#allocation5 + $0x8] sm:$0xff] %v22_v1  ;;  %s32_s19 = int_to_ptr.vmem [resolvable:$true] %s31_s19 }
  0x14   :  { %s64_s20 = scalar_lea.vmem %s32_s19, 256  ;;  %p69_p9 = scmp.lt.s32.totalorder %s32_s19, %s32_s19 }
  0x15   :  { %p65_p8 = scmp.ne.s32.totalorder %s32_s19, %s64_s20  ;;  %p70_p10 = scmp.lt.s32.totalorder %s64_s20, %s64_s20 }
  0x17   :  { %p71_p11 = por %p70_p10, %p69_p9 }
  0x19   :  { %p72_p12 = pnand %p71_p11, %p65_p8 }
  0x1b   :  { %75 = shalt.err (!%p72_p12)
}
  0x1c   :  { %s76_s0 = scalar_lea.hbm %s127_s1, 256 }
  0x1d   :  { %p77_p13 = scmp.ne.s32.totalorder %s127_s1, %s76_s0  ;;  %p80_p0 = scmp.lt.u32.totalorder %s76_s0, %s127_s1 }
  0x1f   :  { %p82_p1 = pnand %p80_p0, %p77_p13 }
  0x21   :  { %85 = shalt.err (!%p82_p1)
}
  0x22   :  { %34 = dma.vmem_to_hbm [thread:$0]  %s32_s19, 256, %s127_s1, [#allocation4]  }
  0x23   :  { %88 = dma.done.wait [#allocation4], 256  }
  0x24   :  { %89 = vsyncadd [#allocation4], 4294967040 }
  0x25   :  { %38 = vsyncpa [#allocation3], 1 }
  0x26   :  { %39 = vsyncpa [#allocation4], 1 }

</bundles_post_ra>
